<compile_context>
chip_gen: v6e
topology: v6e:2x2x1
jax: 0.10.0
libtpu: 0.0.40
codegen_flags: <defaults>
</compile_context>

<pallas_src>
import functools
import math

import jax
import jax.numpy as jnp
from jax import lax
from jax.experimental import pallas as pl
from jax.experimental.pallas import tpu as pltpu


def _full_attention_kernel(*refs, scale, num_heads, has_mask, out_attn):
    """One (batch, L-tile) grid step; statically unrolled loop over heads.

    Refs (in order):
      q_ref : (1, tL, H, E)
      k_ref : (1, S,  H, E)   -- resident across L-tiles (index map l-invariant)
      v_ref : (1, S,  H, D)
      m_ref : (1, tL, S) int8 (only when has_mask; nonzero == masked)
      vo_ref: (1, tL, H, D)
      ao_ref: (1, H, tL, S)   (only when out_attn)
    """
    q_ref, k_ref, v_ref = refs[0], refs[1], refs[2]
    idx = 3
    if has_mask:
        m_ref = refs[idx]
        idx += 1
    vo_ref = refs[idx]
    idx += 1
    ao_ref = refs[idx] if out_attn else None

    if has_mask:
        masked = m_ref[0] != 0              # (tL, S); hoisted out of the head loop

    # Fold the softmax scale into q once for the whole tile (one VPU pass over
    # tL*H*E instead of per-head / per-score multiplies).
    q_all = q_ref[0] * jnp.asarray(scale, q_ref.dtype)   # (tL, H, E)

    neg = jnp.float32(-10000.0)

    for h in range(num_heads):              # H is small: static unroll, static indices
        # Per-head tiles sliced from the head-batched blocks (no host transpose).
        q = q_all[:, h, :]                  # (tL, E), already scaled
        k = k_ref[0, :, h, :]               # (S, E)
        v = v_ref[0, :, h, :]               # (S, D)

        # QK^T as an NT contraction over E (feeds the MXU without an XLU transpose).
        scores = lax.dot_general(
            q, k, (((1,), (1,)), ((), ())),
            preferred_element_type=jnp.float32)          # (tL, S) f32

        if has_mask:
            scores = jnp.where(masked, neg, scores)      # masked_fill(mask, -10000.0)

        # Numerically stable softmax over S, kept in f32 on the VPU.
        m_max = jnp.max(scores, axis=-1, keepdims=True)
        p = jnp.exp(scores - m_max)
        denom = jnp.sum(p, axis=-1, keepdims=True)
        # Exact reciprocal (only tL values) keeps 1e-4 parity with the torch
        # reference; approx=True is a valid EUP offload with looser tolerance.
        attn = p * pl.reciprocal(denom, approx=False)    # (tL, S)

        # A @ V — cast attn to V's dtype so bf16 inputs take the bf16 MXU path.
        out = lax.dot_general(
            attn.astype(v.dtype), v, (((1,), (0,)), ((), ())),
            preferred_element_type=jnp.float32)          # (tL, D)

        if out_attn:
            ao_ref[0, h] = attn.astype(ao_ref.dtype)     # lane-dense (tL, S) store
        vo_ref[0, :, h, :] = out.astype(vo_ref.dtype)


def full_attention(queries, keys, values, attn_mask=None, scale=None, *,
                   output_attention=True, attn_dtype=jnp.float32, tile_l=None):
    """Pallas implementation of FullAttention.forward (eval mode).

    queries: (B, L, H, E); keys: (B, S, H, E); values: (B, S, H, D)
    attn_mask: (B, L, S), truthy/nonzero => masked, or None
    returns: (V, A) with V: (B, L, H, D), A: (B, H, L, S) or None
    """
    B, L, H, E = queries.shape
    _, S, _, D = values.shape
    scale = scale or 1.0 / math.sqrt(E)
    has_mask = attn_mask is not None

    in_itemsize = jnp.dtype(queries.dtype).itemsize
    a_itemsize = jnp.dtype(attn_dtype).itemsize

    def est_vmem(tl):
        # Rough per-step VMEM: double-buffered inputs/outputs + intermediates.
        b = 2 * tl * H * E * in_itemsize          # q
        b += 2 * S * H * E * in_itemsize          # k (resident, 2 buffers allocated)
        b += 2 * S * H * D * in_itemsize          # v
        if has_mask:
            b += 2 * tl * S                       # int8 mask
        b += 2 * tl * H * D * in_itemsize         # V out
        if output_attention:
            b += 2 * H * tl * S * a_itemsize      # A out
        b += 3 * tl * S * 4                       # scores / p / attn per head
        b += tl * H * E * 4                       # scaled-q temporary
        return b

    if tile_l is None:
        budget = 20 * 1024 * 1024                 # keeps double-buffering alive on v7x (64 MiB VMEM)
        if est_vmem(L) <= budget or L <= 64:
            tile_l = L
        else:
            tile_l = L
            for cand in (512, 256, 128, 64):
                if cand < L:
                    tile_l = cand
                    if est_vmem(cand) <= budget:
                        break
    num_l = pl.cdiv(L, tile_l)

    inputs = [queries, keys, values]
    in_specs = [
        pl.BlockSpec((1, tile_l, H, E), lambda b, l: (b, l, 0, 0)),
        pl.BlockSpec((1, S, H, E), lambda b, l: (b, 0, 0, 0)),   # l-invariant: stays resident
        pl.BlockSpec((1, S, H, D), lambda b, l: (b, 0, 0, 0)),
    ]
    if has_mask:
        inputs.append(attn_mask.astype(jnp.int8))                # 4x less traffic than int32
        in_specs.append(pl.BlockSpec((1, tile_l, S), lambda b, l: (b, l, 0)))

    out_shape = [jax.ShapeDtypeStruct((B, L, H, D), queries.dtype)]
    out_specs = [pl.BlockSpec((1, tile_l, H, D), lambda b, l: (b, l, 0, 0))]
    if output_attention:
        out_shape.append(jax.ShapeDtypeStruct((B, H, L, S), attn_dtype))
        out_specs.append(pl.BlockSpec((1, H, tile_l, S), lambda b, l: (b, 0, l, 0)))

    kernel = functools.partial(
        _full_attention_kernel, scale=scale, num_heads=H,
        has_mask=has_mask, out_attn=output_attention)

    bytes_accessed = (queries.size + keys.size + values.size) * in_itemsize
    bytes_accessed += B * L * H * D * in_itemsize
    if has_mask:
        bytes_accessed += B * L * S
    if output_attention:
        bytes_accessed += B * H * L * S * a_itemsize
    cost = pl.CostEstimate(
        flops=2 * B * H * L * S * (E + D),
        transcendentals=B * H * L * S,
        bytes_accessed=int(bytes_accessed))

    vmem_limit = int(max(16 * 1024 * 1024, est_vmem(tile_l) * 5 // 4))

    results = pl.pallas_call(
        kernel,
        out_shape=tuple(out_shape),
        grid_spec=pltpu.PrefetchScalarGridSpec(
            num_scalar_prefetch=0,
            grid=(B, num_l),
            in_specs=in_specs,
            out_specs=out_specs,
        ),
        compiler_params=pltpu.CompilerParams(
            dimension_semantics=("parallel", "parallel"),
            vmem_limit_bytes=vmem_limit,
        ),
        cost_estimate=cost,
    )(*inputs)

    if output_attention:
        v_out, a_out = results
        return v_out, a_out
    return results[0], None


def _reference(queries, keys, values, attn_mask, scale=None):
    B, L, H, E = queries.shape
    scale = scale or 1.0 / math.sqrt(E)
    scores = jnp.einsum('blhe,bshe->bhls', queries, keys) * scale
    if attn_mask is not None:
        m = jnp.broadcast_to(attn_mask[:, None, :, :], scores.shape)
        scores = jnp.where(m, -10000.0, scores)
    A = jax.nn.softmax(scores, axis=-1)
    V = jnp.einsum('bhls,bshd->blhd', A, values)
    return V, A


if __name__ == "__main__":
    key = jax.random.PRNGKey(0)
    B, L, S, H, E, D = 2, 8, 8, 4, 32, 32

    kq, kk, kv, km = jax.random.split(key, 4)
    queries = jax.random.normal(kq, (B, L, H, E), dtype=jnp.float32)
    keys = jax.random.normal(kk, (B, S, H, E), dtype=jnp.float32)
    values = jax.random.normal(kv, (B, S, H, D), dtype=jnp.float32)
    # deterministic boolean mask (True => masked)
    attn_mask = jax.random.uniform(km, (B, L, S)) < 0.2

    # Masked path.
    V, A = full_attention(queries, keys, values, attn_mask)
    V = jax.block_until_ready(V)
    A = jax.block_until_ready(A)
    V_ref, A_ref = _reference(queries, keys, values, attn_mask)
    assert jnp.allclose(V, V_ref, atol=1e-4, rtol=1e-4), "V mismatch (masked)"
    assert jnp.allclose(A, A_ref, atol=1e-4, rtol=1e-4), "A mismatch (masked)"

    # No-mask path (skips the mask input entirely).
    V2, A2 = full_attention(queries, keys, values, None)
    V2 = jax.block_until_ready(V2)
    A2 = jax.block_until_ready(A2)
    V2_ref, A2_ref = _reference(queries, keys, values, None)
    assert jnp.allclose(V2, V2_ref, atol=1e-4, rtol=1e-4), "V mismatch (no mask)"
    assert jnp.allclose(A2, A2_ref, atol=1e-4, rtol=1e-4), "A mismatch (no mask)"

    # output_attention=False path (skips the A output writeback entirely).
    V3, A3 = full_attention(queries, keys, values, attn_mask, output_attention=False)
    V3 = jax.block_until_ready(V3)
    assert A3 is None
    assert jnp.allclose(V3, V_ref, atol=1e-4, rtol=1e-4), "V mismatch (no A out)"

    print("KERNEL_OK")
</pallas_src>

<mosaic_0001>
module attributes {stable_mosaic.version = 11 : i64} {
  func.func @_full_attention_kernel(%arg0: i32, %arg1: i32, %arg2: memref<1x8x4x32xf32, #tpu.memory_space<vmem>>, %arg3: memref<1x8x4x32xf32, #tpu.memory_space<vmem>>, %arg4: memref<1x8x4x32xf32, #tpu.memory_space<vmem>>, %arg5: memref<1x8x8xi8, #tpu.memory_space<vmem>>, %arg6: memref<1x8x4x32xf32, #tpu.memory_space<vmem>>, %arg7: memref<1x4x8x8xf32, #tpu.memory_space<vmem>>) attributes {dimension_semantics = [#tpu.dimension_semantics<parallel>, #tpu.dimension_semantics<parallel>], iteration_bounds = array<i64: 2, 1>, scalar_prefetch = 0 : i64, scratch_operands = 0 : i64, tpu.core_type = #tpu.core_type<tc>, window_params = [{transform_indices = @transform_0, window_bounds = array<i64: 1, 8, 4, 32>}, {transform_indices = @transform_1, window_bounds = array<i64: 1, 8, 4, 32>}, {transform_indices = @transform_2, window_bounds = array<i64: 1, 8, 4, 32>}, {transform_indices = @transform_3, window_bounds = array<i64: 1, 8, 8>}, {transform_indices = @transform_4, window_bounds = array<i64: 1, 8, 4, 32>}, {transform_indices = @transform_5, window_bounds = array<i64: 1, 4, 8, 8>}]} {
    %c0 = arith.constant 0 : index
    %c0_0 = arith.constant 0 : index
    %c0_1 = arith.constant 0 : index
    %0 = vector.load %arg5[%c0, %c0_0, %c0_1] : memref<1x8x8xi8, #tpu.memory_space<vmem>>, vector<1x8x8xi8>
    %1 = vector.shape_cast %0 : vector<1x8x8xi8> to vector<8x8xi8>
    %c0_i8 = arith.constant 0 : i8
    %2 = vector.broadcast %c0_i8 : i8 to vector<8x8xi8>
    %3 = arith.cmpi ne, %1, %2 : vector<8x8xi8>
    %c0_2 = arith.constant 0 : index
    %c0_3 = arith.constant 0 : index
    %c0_4 = arith.constant 0 : index
    %c0_5 = arith.constant 0 : index
    %4 = vector.load %arg2[%c0_2, %c0_3, %c0_4, %c0_5] : memref<1x8x4x32xf32, #tpu.memory_space<vmem>>, vector<1x8x4x32xf32>
    %5 = vector.shape_cast %4 : vector<1x8x4x32xf32> to vector<8x4x32xf32>
    %cst = arith.constant 0.176776692 : f32
    %6 = vector.broadcast %cst : f32 to vector<8x4x32xf32>
    %7 = arith.mulf %5, %6 : vector<8x4x32xf32>
    %8 = vector.extract_strided_slice %7 {offsets = [0, 0, 0], sizes = [8, 1, 32], strides = [1, 1, 1]} : vector<8x4x32xf32> to vector<8x1x32xf32>
    %9 = vector.shape_cast %8 : vector<8x1x32xf32> to vector<8x32xf32>
    %c0_6 = arith.constant 0 : index
    %c0_7 = arith.constant 0 : index
    %c0_8 = arith.constant 0 : index
    %c0_9 = arith.constant 0 : index
    %10 = vector.load %arg3[%c0_6, %c0_7, %c0_8, %c0_9] : memref<1x8x4x32xf32, #tpu.memory_space<vmem>>, vector<1x8x1x32xf32>
    %11 = vector.shape_cast %10 : vector<1x8x1x32xf32> to vector<8x32xf32>
    %c0_10 = arith.constant 0 : index
    %c0_11 = arith.constant 0 : index
    %c0_12 = arith.constant 0 : index
    %c0_13 = arith.constant 0 : index
    %12 = vector.load %arg4[%c0_10, %c0_11, %c0_12, %c0_13] : memref<1x8x4x32xf32, #tpu.memory_space<vmem>>, vector<1x8x1x32xf32>
    %13 = vector.shape_cast %12 : vector<1x8x1x32xf32> to vector<8x32xf32>
    %cst_14 = arith.constant dense<0.000000e+00> : vector<8x8xf32>
    %14 = tpu.matmul %9, %11, %cst_14 {dimension_numbers = #tpu.dot_dimension_numbers<[1], [1], [0], [0], [0, 0, 1, 0], [], []>} : vector<8x32xf32>, vector<8x32xf32>, vector<8x8xf32> -> vector<8x8xf32>
    %cst_15 = arith.constant -1.000000e+04 : f32
    %15 = vector.broadcast %cst_15 : f32 to vector<8x8xf32>
    %16 = arith.select %3, %15, %14 : vector<8x8xi1>, vector<8x8xf32>
    %cst_16 = arith.constant dense<0xFF800000> : vector<8xf32>
    %17 = vector.multi_reduction <maximumf>, %16, %cst_16 [1] : vector<8x8xf32> to vector<8xf32>
    %18 = vector.shape_cast %17 : vector<8xf32> to vector<8x1xf32>
    %19 = vector.broadcast %18 : vector<8x1xf32> to vector<8x8xf32>
    %20 = arith.subf %16, %19 : vector<8x8xf32>
    %21 = math.exp %20 : vector<8x8xf32>
    %cst_17 = arith.constant dense<0.000000e+00> : vector<8xf32>
    %22 = vector.multi_reduction <add>, %21, %cst_17 [1] : vector<8x8xf32> to vector<8xf32>
    %23 = vector.shape_cast %22 : vector<8xf32> to vector<8x1xf32>
    %24 = tpu.reciprocal %23 : vector<8x1xf32> -> vector<8x1xf32>
    %25 = vector.broadcast %24 : vector<8x1xf32> to vector<8x8xf32>
    %26 = arith.mulf %21, %25 : vector<8x8xf32>
    %cst_18 = arith.constant dense<0.000000e+00> : vector<8x32xf32>
    %27 = tpu.matmul %26, %13, %cst_18 {dimension_numbers = #tpu.dot_dimension_numbers<[1], [0], [0], [1], [0, 0, 1, 1], [], []>} : vector<8x8xf32>, vector<8x32xf32>, vector<8x32xf32> -> vector<8x32xf32>
    %c0_19 = arith.constant 0 : index
    %c0_20 = arith.constant 0 : index
    %c0_21 = arith.constant 0 : index
    %c0_22 = arith.constant 0 : index
    %28 = vector.load %arg7[%c0_19, %c0_20, %c0_21, %c0_22] : memref<1x4x8x8xf32, #tpu.memory_space<vmem>>, vector<1x1x8x8xf32>
    %29 = vector.shape_cast %28 : vector<1x1x8x8xf32> to vector<8x8xf32>
    %30 = vector.shape_cast %26 : vector<8x8xf32> to vector<1x1x8x8xf32>
    tpu.vector_store %arg7[%c0_19, %c0_20, %c0_21, %c0_22], %30 {strides = array<i32>} : memref<1x4x8x8xf32, #tpu.memory_space<vmem>>, vector<1x1x8x8xf32>,
    %c0_23 = arith.constant 0 : index
    %c0_24 = arith.constant 0 : index
    %c0_25 = arith.constant 0 : index
    %c0_26 = arith.constant 0 : index
    %31 = vector.load %arg6[%c0_23, %c0_24, %c0_25, %c0_26] : memref<1x8x4x32xf32, #tpu.memory_space<vmem>>, vector<1x8x1x32xf32>
    %32 = vector.shape_cast %31 : vector<1x8x1x32xf32> to vector<8x32xf32>
    %33 = vector.shape_cast %27 : vector<8x32xf32> to vector<1x8x1x32xf32>
    tpu.vector_store %arg6[%c0_23, %c0_24, %c0_25, %c0_26], %33 {strides = array<i32>} : memref<1x8x4x32xf32, #tpu.memory_space<vmem>>, vector<1x8x1x32xf32>,
    %34 = vector.extract_strided_slice %7 {offsets = [0, 1, 0], sizes = [8, 1, 32], strides = [1, 1, 1]} : vector<8x4x32xf32> to vector<8x1x32xf32>
    %35 = vector.shape_cast %34 : vector<8x1x32xf32> to vector<8x32xf32>
    %c0_27 = arith.constant 0 : index
    %c0_28 = arith.constant 0 : index
    %c1 = arith.constant 1 : index
    %c0_29 = arith.constant 0 : index
    %36 = vector.load %arg3[%c0_27, %c0_28, %c1, %c0_29] : memref<1x8x4x32xf32, #tpu.memory_space<vmem>>, vector<1x8x1x32xf32>
    %37 = vector.shape_cast %36 : vector<1x8x1x32xf32> to vector<8x32xf32>
    %c0_30 = arith.constant 0 : index
    %c0_31 = arith.constant 0 : index
    %c1_32 = arith.constant 1 : index
    %c0_33 = arith.constant 0 : index
    %38 = vector.load %arg4[%c0_30, %c0_31, %c1_32, %c0_33] : memref<1x8x4x32xf32, #tpu.memory_space<vmem>>, vector<1x8x1x32xf32>
    %39 = vector.shape_cast %38 : vector<1x8x1x32xf32> to vector<8x32xf32>
    %cst_34 = arith.constant dense<0.000000e+00> : vector<8x8xf32>
    %40 = tpu.matmul %35, %37, %cst_34 {dimension_numbers = #tpu.dot_dimension_numbers<[1], [1], [0], [0], [0, 0, 1, 0], [], []>} : vector<8x32xf32>, vector<8x32xf32>, vector<8x8xf32> -> vector<8x8xf32>
    %cst_35 = arith.constant -1.000000e+04 : f32
    %41 = vector.broadcast %cst_35 : f32 to vector<8x8xf32>
    %42 = arith.select %3, %41, %40 : vector<8x8xi1>, vector<8x8xf32>
    %cst_36 = arith.constant dense<0xFF800000> : vector<8xf32>
    %43 = vector.multi_reduction <maximumf>, %42, %cst_36 [1] : vector<8x8xf32> to vector<8xf32>
    %44 = vector.shape_cast %43 : vector<8xf32> to vector<8x1xf32>
    %45 = vector.broadcast %44 : vector<8x1xf32> to vector<8x8xf32>
    %46 = arith.subf %42, %45 : vector<8x8xf32>
    %47 = math.exp %46 : vector<8x8xf32>
    %cst_37 = arith.constant dense<0.000000e+00> : vector<8xf32>
    %48 = vector.multi_reduction <add>, %47, %cst_37 [1] : vector<8x8xf32> to vector<8xf32>
    %49 = vector.shape_cast %48 : vector<8xf32> to vector<8x1xf32>
    %50 = tpu.reciprocal %49 : vector<8x1xf32> -> vector<8x1xf32>
    %51 = vector.broadcast %50 : vector<8x1xf32> to vector<8x8xf32>
    %52 = arith.mulf %47, %51 : vector<8x8xf32>
    %cst_38 = arith.constant dense<0.000000e+00> : vector<8x32xf32>
    %53 = tpu.matmul %52, %39, %cst_38 {dimension_numbers = #tpu.dot_dimension_numbers<[1], [0], [0], [1], [0, 0, 1, 1], [], []>} : vector<8x8xf32>, vector<8x32xf32>, vector<8x32xf32> -> vector<8x32xf32>
    %c0_39 = arith.constant 0 : index
    %c1_40 = arith.constant 1 : index
    %c0_41 = arith.constant 0 : index
    %c0_42 = arith.constant 0 : index
    %54 = vector.load %arg7[%c0_39, %c1_40, %c0_41, %c0_42] : memref<1x4x8x8xf32, #tpu.memory_space<vmem>>, vector<1x1x8x8xf32>
    %55 = vector.shape_cast %54 : vector<1x1x8x8xf32> to vector<8x8xf32>
    %56 = vector.shape_cast %52 : vector<8x8xf32> to vector<1x1x8x8xf32>
    tpu.vector_store %arg7[%c0_39, %c1_40, %c0_41, %c0_42], %56 {strides = array<i32>} : memref<1x4x8x8xf32, #tpu.memory_space<vmem>>, vector<1x1x8x8xf32>,
    %c0_43 = arith.constant 0 : index
    %c0_44 = arith.constant 0 : index
    %c1_45 = arith.constant 1 : index
    %c0_46 = arith.constant 0 : index
    %57 = vector.load %arg6[%c0_43, %c0_44, %c1_45, %c0_46] : memref<1x8x4x32xf32, #tpu.memory_space<vmem>>, vector<1x8x1x32xf32>
    %58 = vector.shape_cast %57 : vector<1x8x1x32xf32> to vector<8x32xf32>
    %59 = vector.shape_cast %53 : vector<8x32xf32> to vector<1x8x1x32xf32>
    tpu.vector_store %arg6[%c0_43, %c0_44, %c1_45, %c0_46], %59 {strides = array<i32>} : memref<1x8x4x32xf32, #tpu.memory_space<vmem>>, vector<1x8x1x32xf32>,
    %60 = vector.extract_strided_slice %7 {offsets = [0, 2, 0], sizes = [8, 1, 32], strides = [1, 1, 1]} : vector<8x4x32xf32> to vector<8x1x32xf32>
    %61 = vector.shape_cast %60 : vector<8x1x32xf32> to vector<8x32xf32>
    %c0_47 = arith.constant 0 : index
    %c0_48 = arith.constant 0 : index
    %c2 = arith.constant 2 : index
    %c0_49 = arith.constant 0 : index
    %62 = vector.load %arg3[%c0_47, %c0_48, %c2, %c0_49] : memref<1x8x4x32xf32, #tpu.memory_space<vmem>>, vector<1x8x1x32xf32>
    %63 = vector.shape_cast %62 : vector<1x8x1x32xf32> to vector<8x32xf32>
    %c0_50 = arith.constant 0 : index
    %c0_51 = arith.constant 0 : index
    %c2_52 = arith.constant 2 : index
    %c0_53 = arith.constant 0 : index
    %64 = vector.load %arg4[%c0_50, %c0_51, %c2_52, %c0_53] : memref<1x8x4x32xf32, #tpu.memory_space<vmem>>, vector<1x8x1x32xf32>
    %65 = vector.shape_cast %64 : vector<1x8x1x32xf32> to vector<8x32xf32>
    %cst_54 = arith.constant dense<0.000000e+00> : vector<8x8xf32>
    %66 = tpu.matmul %61, %63, %cst_54 {dimension_numbers = #tpu.dot_dimension_numbers<[1], [1], [0], [0], [0, 0, 1, 0], [], []>} : vector<8x32xf32>, vector<8x32xf32>, vector<8x8xf32> -> vector<8x8xf32>
    %cst_55 = arith.constant -1.000000e+04 : f32
    %67 = vector.broadcast %cst_55 : f32 to vector<8x8xf32>
    %68 = arith.select %3, %67, %66 : vector<8x8xi1>, vector<8x8xf32>
    %cst_56 = arith.constant dense<0xFF800000> : vector<8xf32>
    %69 = vector.multi_reduction <maximumf>, %68, %cst_56 [1] : vector<8x8xf32> to vector<8xf32>
    %70 = vector.shape_cast %69 : vector<8xf32> to vector<8x1xf32>
    %71 = vector.broadcast %70 : vector<8x1xf32> to vector<8x8xf32>
    %72 = arith.subf %68, %71 : vector<8x8xf32>
    %73 = math.exp %72 : vector<8x8xf32>
    %cst_57 = arith.constant dense<0.000000e+00> : vector<8xf32>
    %74 = vector.multi_reduction <add>, %73, %cst_57 [1] : vector<8x8xf32> to vector<8xf32>
    %75 = vector.shape_cast %74 : vector<8xf32> to vector<8x1xf32>
    %76 = tpu.reciprocal %75 : vector<8x1xf32> -> vector<8x1xf32>
    %77 = vector.broadcast %76 : vector<8x1xf32> to vector<8x8xf32>
    %78 = arith.mulf %73, %77 : vector<8x8xf32>
    %cst_58 = arith.constant dense<0.000000e+00> : vector<8x32xf32>
    %79 = tpu.matmul %78, %65, %cst_58 {dimension_numbers = #tpu.dot_dimension_numbers<[1], [0], [0], [1], [0, 0, 1, 1], [], []>} : vector<8x8xf32>, vector<8x32xf32>, vector<8x32xf32> -> vector<8x32xf32>
    %c0_59 = arith.constant 0 : index
    %c2_60 = arith.constant 2 : index
    %c0_61 = arith.constant 0 : index
    %c0_62 = arith.constant 0 : index
    %80 = vector.load %arg7[%c0_59, %c2_60, %c0_61, %c0_62] : memref<1x4x8x8xf32, #tpu.memory_space<vmem>>, vector<1x1x8x8xf32>
    %81 = vector.shape_cast %80 : vector<1x1x8x8xf32> to vector<8x8xf32>
    %82 = vector.shape_cast %78 : vector<8x8xf32> to vector<1x1x8x8xf32>
    tpu.vector_store %arg7[%c0_59, %c2_60, %c0_61, %c0_62], %82 {strides = array<i32>} : memref<1x4x8x8xf32, #tpu.memory_space<vmem>>, vector<1x1x8x8xf32>,
    %c0_63 = arith.constant 0 : index
    %c0_64 = arith.constant 0 : index
    %c2_65 = arith.constant 2 : index
    %c0_66 = arith.constant 0 : index
    %83 = vector.load %arg6[%c0_63, %c0_64, %c2_65, %c0_66] : memref<1x8x4x32xf32, #tpu.memory_space<vmem>>, vector<1x8x1x32xf32>
    %84 = vector.shape_cast %83 : vector<1x8x1x32xf32> to vector<8x32xf32>
    %85 = vector.shape_cast %79 : vector<8x32xf32> to vector<1x8x1x32xf32>
    tpu.vector_store %arg6[%c0_63, %c0_64, %c2_65, %c0_66], %85 {strides = array<i32>} : memref<1x8x4x32xf32, #tpu.memory_space<vmem>>, vector<1x8x1x32xf32>,
    %86 = vector.extract_strided_slice %7 {offsets = [0, 3, 0], sizes = [8, 1, 32], strides = [1, 1, 1]} : vector<8x4x32xf32> to vector<8x1x32xf32>
    %87 = vector.shape_cast %86 : vector<8x1x32xf32> to vector<8x32xf32>
    %c0_67 = arith.constant 0 : index
    %c0_68 = arith.constant 0 : index
    %c3 = arith.constant 3 : index
    %c0_69 = arith.constant 0 : index
    %88 = vector.load %arg3[%c0_67, %c0_68, %c3, %c0_69] : memref<1x8x4x32xf32, #tpu.memory_space<vmem>>, vector<1x8x1x32xf32>
    %89 = vector.shape_cast %88 : vector<1x8x1x32xf32> to vector<8x32xf32>
    %c0_70 = arith.constant 0 : index
    %c0_71 = arith.constant 0 : index
    %c3_72 = arith.constant 3 : index
    %c0_73 = arith.constant 0 : index
    %90 = vector.load %arg4[%c0_70, %c0_71, %c3_72, %c0_73] : memref<1x8x4x32xf32, #tpu.memory_space<vmem>>, vector<1x8x1x32xf32>
    %91 = vector.shape_cast %90 : vector<1x8x1x32xf32> to vector<8x32xf32>
    %cst_74 = arith.constant dense<0.000000e+00> : vector<8x8xf32>
    %92 = tpu.matmul %87, %89, %cst_74 {dimension_numbers = #tpu.dot_dimension_numbers<[1], [1], [0], [0], [0, 0, 1, 0], [], []>} : vector<8x32xf32>, vector<8x32xf32>, vector<8x8xf32> -> vector<8x8xf32>
    %cst_75 = arith.constant -1.000000e+04 : f32
    %93 = vector.broadcast %cst_75 : f32 to vector<8x8xf32>
    %94 = arith.select %3, %93, %92 : vector<8x8xi1>, vector<8x8xf32>
    %cst_76 = arith.constant dense<0xFF800000> : vector<8xf32>
    %95 = vector.multi_reduction <maximumf>, %94, %cst_76 [1] : vector<8x8xf32> to vector<8xf32>
    %96 = vector.shape_cast %95 : vector<8xf32> to vector<8x1xf32>
    %97 = vector.broadcast %96 : vector<8x1xf32> to vector<8x8xf32>
    %98 = arith.subf %94, %97 : vector<8x8xf32>
    %99 = math.exp %98 : vector<8x8xf32>
    %cst_77 = arith.constant dense<0.000000e+00> : vector<8xf32>
    %100 = vector.multi_reduction <add>, %99, %cst_77 [1] : vector<8x8xf32> to vector<8xf32>
    %101 = vector.shape_cast %100 : vector<8xf32> to vector<8x1xf32>
    %102 = tpu.reciprocal %101 : vector<8x1xf32> -> vector<8x1xf32>
    %103 = vector.broadcast %102 : vector<8x1xf32> to vector<8x8xf32>
    %104 = arith.mulf %99, %103 : vector<8x8xf32>
    %cst_78 = arith.constant dense<0.000000e+00> : vector<8x32xf32>
    %105 = tpu.matmul %104, %91, %cst_78 {dimension_numbers = #tpu.dot_dimension_numbers<[1], [0], [0], [1], [0, 0, 1, 1], [], []>} : vector<8x8xf32>, vector<8x32xf32>, vector<8x32xf32> -> vector<8x32xf32>
    %c0_79 = arith.constant 0 : index
    %c3_80 = arith.constant 3 : index
    %c0_81 = arith.constant 0 : index
    %c0_82 = arith.constant 0 : index
    %106 = vector.load %arg7[%c0_79, %c3_80, %c0_81, %c0_82] : memref<1x4x8x8xf32, #tpu.memory_space<vmem>>, vector<1x1x8x8xf32>
    %107 = vector.shape_cast %106 : vector<1x1x8x8xf32> to vector<8x8xf32>
    %108 = vector.shape_cast %104 : vector<8x8xf32> to vector<1x1x8x8xf32>
    tpu.vector_store %arg7[%c0_79, %c3_80, %c0_81, %c0_82], %108 {strides = array<i32>} : memref<1x4x8x8xf32, #tpu.memory_space<vmem>>, vector<1x1x8x8xf32>,
    %c0_83 = arith.constant 0 : index
    %c0_84 = arith.constant 0 : index
    %c3_85 = arith.constant 3 : index
    %c0_86 = arith.constant 0 : index
    %109 = vector.load %arg6[%c0_83, %c0_84, %c3_85, %c0_86] : memref<1x8x4x32xf32, #tpu.memory_space<vmem>>, vector<1x8x1x32xf32>
    %110 = vector.shape_cast %109 : vector<1x8x1x32xf32> to vector<8x32xf32>
    %111 = vector.shape_cast %105 : vector<8x32xf32> to vector<1x8x1x32xf32>
    tpu.vector_store %arg6[%c0_83, %c0_84, %c3_85, %c0_86], %111 {strides = array<i32>} : memref<1x8x4x32xf32, #tpu.memory_space<vmem>>, vector<1x8x1x32xf32>,
    return
  }
  func.func @transform_0(%arg0: i32, %arg1: i32) -> (i32, i32, i32, i32) {
    %c0_i32 = arith.constant 0 : i32
    %c0_i32_0 = arith.constant 0 : i32
    %c0_i32_1 = arith.constant 0 : i32
    return %arg0, %arg1, %c0_i32, %c0_i32_0 : i32, i32, i32, i32
  }
  func.func @transform_1(%arg0: i32, %arg1: i32) -> (i32, i32, i32, i32) {
    %c0_i32 = arith.constant 0 : i32
    %c0_i32_0 = arith.constant 0 : i32
    %c0_i32_1 = arith.constant 0 : i32
    %c0_i32_2 = arith.constant 0 : i32
    return %arg0, %c0_i32, %c0_i32_0, %c0_i32_1 : i32, i32, i32, i32
  }
  func.func @transform_2(%arg0: i32, %arg1: i32) -> (i32, i32, i32, i32) {
    %c0_i32 = arith.constant 0 : i32
    %c0_i32_0 = arith.constant 0 : i32
    %c0_i32_1 = arith.constant 0 : i32
    %c0_i32_2 = arith.constant 0 : i32
    return %arg0, %c0_i32, %c0_i32_0, %c0_i32_1 : i32, i32, i32, i32
  }
  func.func @transform_3(%arg0: i32, %arg1: i32) -> (i32, i32, i32) {
    %c0_i32 = arith.constant 0 : i32
    %c0_i32_0 = arith.constant 0 : i32
    return %arg0, %arg1, %c0_i32 : i32, i32, i32
  }
  func.func @transform_4(%arg0: i32, %arg1: i32) -> (i32, i32, i32, i32) {
    %c0_i32 = arith.constant 0 : i32
    %c0_i32_0 = arith.constant 0 : i32
    %c0_i32_1 = arith.constant 0 : i32
    return %arg0, %arg1, %c0_i32, %c0_i32_0 : i32, i32, i32, i32
  }
  func.func @transform_5(%arg0: i32, %arg1: i32) -> (i32, i32, i32, i32) {
    %c0_i32 = arith.constant 0 : i32
    %c0_i32_0 = arith.constant 0 : i32
    %c0_i32_1 = arith.constant 0 : i32
    return %arg0, %c0_i32, %arg1, %c0_i32_0 : i32, i32, i32, i32
  }
}

</mosaic_0001>

<bundles_post_ra>
// kernel: tpu_custom_call.1
= control target key start
LH: loop header
LB: loop body
LE: loop exit
PB: predicated region body
PF: predicated region fallthrough
CT: control target
= control target key end

     0   :  { %s2945_s0 = inlined_call_operand.hbm [shape: f32[2,8,4,32], index: 0, kind: input, shape index: {}]   ;;  %s2946_s1 = inlined_call_operand.hbm [shape: f32[2,8,4,32], index: 1, kind: input, shape index: {}]   ;;  %s2947_s2 = inlined_call_operand.hbm [shape: f32[2,8,4,32], index: 2, kind: input, shape index: {}]   ;;  %s2948_s3 = inlined_call_operand.vmem [shape: s8[2,8,8], index: 3, kind: input, shape index: {}]   ;;  %s2949_s4 = inlined_call_operand.hbm [shape: f32[2,8,4,32], index: 4, kind: output, shape index: {0}]   ;;  %s2950_s5 = inlined_call_operand.hbm [shape: f32[2,4,8,8], index: 5, kind: output, shape index: {1}]  }
   0x1   :  { %2958 = sst [smem:[#allocation20_spill]] %s2946_s1 }
   0x2   :  { %11 = vsyncpa [#allocation3], 0 }
   0x3   :  { %13 = vsyncpa [#allocation3 + $0x1], 0 }
   0x4   :  { %14 = vsyncpa [#allocation6], 0 }
   0x5   :  { %16 = vsyncpa [#allocation6 + $0x1], 0 }
   0x6   :  { %17 = vsyncpa [#allocation4], 0 }
   0x7   :  { %19 = vsyncpa [#allocation4 + $0x1], 0 }
   0x8   :  { %20 = vsyncpa [#allocation10], 0 }
   0x9   :  { %22 = vsyncpa [#allocation10 + $0x1], 0  ;;  %s2298_s18 = smov 0   ;;  %s2300_s19 = smov 0  }
   0xa   :  { %s2302_s20 = smov 0   ;;  %s2304_s21 = smov 0  }
   0xb   :  { %s2306_s22 = smov 0   ;;  %s2308_s23 = smov 0  }
   0xc LB: > { %2959 = sst [smem:[#allocation15_spill]] %s2231_s18  ;;  %s2329_s24 = sadd.s32 4294967295, %s2251_s23   ;;  %s2251_s23 = sphi %s2308_s23, %s28_s23   ;;  %s2247_s22 = sphi %s2306_s22, %s2980_s22   ;;  %s2243_s21 = sphi %s2304_s21, %s2979_s21   ;;  %s2239_s20 = sphi %s2302_s20, %s2983_s20   ;;  %s2235_s19 = sphi %s2300_s19, %s2982_s19   ;;  %s2231_s18 = sphi %s2298_s18, %s2981_s18  }
   0xd   : > { %2960 = sst [smem:[#allocation16_spill]] %s2247_s22  ;;  %s1847_s25 = sadd.s32 4294967294, %s2251_s23  }
   0xe   : > { %s40_s26 = sadd.s32 1, %s2247_s22  ;;  %s49_s27 = sadd.s32 1, %s2239_s20 }
   0xf   : > { %p42_p0 = scmp.ge.s32.totalorder %s40_s26, 2  ;;  %p56_p1 = scmp.ne.s32.totalorder %s2239_s20, %s2235_s19 }
  0x10   : > { %p57_p2 = scmp.eq.s32.totalorder %s2251_s23, 0  ;;  %p62_p3 = scmp.ne.s32.totalorder %s2235_s19, %s2231_s18 }
  0x11   : > { %s2985_s26 = smov (%p42_p0, %s40_s26), 0  ;;  %p63_p5 = scmp.eq.s32.totalorder %s2329_s24, 0 }
  0x12   : > { %2961 = sst [smem:[#allocation17_spill]] %s2985_s26  ;;  %p2341_p4 = por %p57_p2, %p56_p1 }
  0x13   : > { %s44_s29 = ssub.s32 %s2247_s22, %s2985_s26  ;;  %p168_p6 = scmp.eq.s32.totalorder %s2329_s24, 1 }
  0x14   : > { %p47_p7 = scmp.eq.s32.totalorder %s44_s29, 0  ;;  %p2349_p8 = por %p63_p5, %p62_p3 }
  0x15   : > { %p2353_p9 = por %p168_p6, %p56_p1  ;;  %p174_p10 = scmp.eq.s32.totalorder %s1847_s25, 1 }
  0x16   : > { %s2358_s7 = scalar_select %p47_p7, %s2239_s20, %s49_s27  }
  0x17   : > { %p2360_p11 = por %p174_p10, %p62_p3  ;;  %p1977_p13 = scmp.lt.s32.totalorder %s2251_s23, 2 }
  0x18   : > { %2965 = sst [smem:[#allocation18_spill]] %s2358_s7  ;;  %s2951_s9 = sand.u32 1, %s2239_s20  }
  0x19   : > { %s2966_s8 = scalar_select %p2360_p11, 1, 0 }
  0x1a   : > { %s2369_s10 = sshll.u32 %s2951_s9, 5  ;;  %s2372_s11 = sshll.u32 %s2247_s22, 9 }
  0x1b   : > { %2967 = sst [smem:[#allocation19_spill]] %s2966_s8  ;;  %p2376_p0 = pnand %p1977_p13, %p2341_p4 }
  0x1c   : > { %s245_s13 = sand.u32 1, %s2251_s23   ;;  %s2969_s1 = sld [smem:[#allocation20_spill]] }
  0x1d   : > { %s249_s17 = scalar_lea.vmem [#allocation5], %s2369_s10  ;;  %p1859_p1 = scmp.ge.s32.totalorder %s2251_s23, 1 }
  0x1e   : > { %s256_s25 = sshll.u32 %s249_s17, 4  ;;  %p295_p2 = scmp.lt.s32.totalorder %s2251_s23, 3  ;;  %s257_s25 = int_to_ptr.vmem [resolvable:$true] %s256_s25 }
  0x1f   : > { %s2388_s27 = scalar_lea.sflag [#allocation6], %s245_s13  ;;  %p2055_p3 = pneg %p2376_p0 }
  0x20   : > { %s2066_s28 = scalar_lea.vmem %s257_s25, 512  ;;  %s2253_s29 = smov [#allocation5]  }
  0x21   : > { %p2067_p4 = scmp.ne.s32.totalorder %s257_s25, %s2066_s28  ;;  %s2071_s9 = sshll.u32 %s2253_s29, 4  ;;  %s2072_s9 = int_to_ptr.vmem [resolvable:$false] %s2071_s9 }
  0x22   : > { %s255_s16 = scalar_lea.hbm %s2969_s1, %s2372_s11  ;;  %s2073_s14 = scalar_lea.vmem %s2072_s9, 1024 }
  0x23   : > { %p2069_p5 = pnand %p2067_p4, %p2055_p3  ;;  %p2074_p7 = scmp.lt.s32.totalorder %s257_s25, %s2072_s9 }
  0x24   : > { %p2075_p10 = scmp.lt.s32.totalorder %s2073_s14, %s2066_s28 }
  0x25   : > { %p2070_p6 = pneg %p2069_p5 }
  0x26   : > { %p2076_p13 = por %p2075_p10, %p2074_p7 }
  0x28   : > { %p2077_p12 = pnand %p2076_p13, %p2070_p6 }
  0x2a   : > { %2080 = shalt.err (!%p2077_p12)
}
  0x2b   : > { %s2956_s15 = smov 64   ;;  %s2255_s13 = smov 4  }
  0x2c   : > { %1966 = dma.hbm_to_vmem [thread:$0]  (!%p2376_p0), %s255_s16, 512, %s257_s25, %s2388_s27, %s2956_s15, %s2956_s15, %s2255_s13  }
  0x2d   : > { %p2405_p4 = pnand %p1859_p1, %p295_p2  ;;  %s234_s29 = scalar_lea.hbm %s2945_s0, %s2372_s11 }
  0x2e   : > { %s226_s14 = scalar_lea.vmem [#allocation2], %s2369_s10  ;;  %s276_s7 = scalar_lea.hbm %s2947_s2, %s2372_s11 }
  0x2f   : > { %s235_s1 = sshll.u32 %s226_s14, 4  ;;  %s2971_s8 = sand.u32 1, %s2239_s20   ;;  %s236_s1 = int_to_ptr.vmem [resolvable:$true] %s235_s1 }
  0x30   : > { %s223_s18 = scalar_lea.sflag [#allocation3], %s2971_s8  ;;  %s2094_s16 = scalar_lea.vmem %s236_s1, 512 }
  0x31   : > { %p2095_p12 = scmp.ne.s32.totalorder %s236_s1, %s2094_s16  ;;  %s2256_s25 = smov [#allocation2]  }
  0x32   : > { %s2099_s15 = sshll.u32 %s2256_s25, 4  ;;  %s2100_s15 = int_to_ptr.vmem [resolvable:$false] %s2099_s15 }
  0x33   : > { %p2097_p1 = pnand %p2095_p12, %p2055_p3  ;;  %s2101_s17 = scalar_lea.vmem %s2100_s15, 1024 }
  0x34   : > { %p2102_p5 = scmp.lt.s32.totalorder %s236_s1, %s2100_s15  ;;  %p2103_p6 = scmp.lt.s32.totalorder %s2101_s17, %s2094_s16 }
  0x35   : > { %p2098_p2 = pneg %p2097_p1 }
  0x36   : > { %p2104_p7 = por %p2103_p6, %p2102_p5 }
  0x38   : > { %p2105_p10 = pnand %p2104_p7, %p2098_p2 }
  0x3a   : > { %2108 = shalt.err (!%p2105_p10)
}
  0x3b   : > { %s2972_s22 = smov 64   ;;  %s270_s26 = scalar_lea.vmem [#allocation7], %s2369_s10 }
  0x3c   : > { %1963 = dma.hbm_to_vmem [thread:$0]  (!%p2376_p0), %s234_s29, 512, %s236_s1, %s223_s18, %s2972_s22, %s2972_s22, %s2255_s13  }
  0x3d   : > { %s277_s8 = sshll.u32 %s270_s26, 4  ;;  %s2257_s15 = smov [#allocation7]   ;;  %s278_s8 = int_to_ptr.vmem [resolvable:$true] %s277_s8 }
  0x3e   : > { %s2122_s28 = scalar_lea.vmem %s278_s8, 512  ;;  %s2127_s14 = sshll.u32 %s2257_s15, 4  ;;  %s2128_s14 = int_to_ptr.vmem [resolvable:$false] %s2127_s14 }
  0x3f   : > { %p2123_p13 = scmp.ne.s32.totalorder %s278_s8, %s2122_s28  ;;  %s2129_s16 = scalar_lea.vmem %s2128_s14, 1024 }
  0x40   : > { %p2130_p2 = scmp.lt.s32.totalorder %s278_s8, %s2128_s14  ;;  %p2131_p5 = scmp.lt.s32.totalorder %s2129_s16, %s2122_s28 }
  0x41   : > { %p2125_p12 = pnand %p2123_p13, %p2055_p3 }
  0x42   : > { %p2132_p6 = por %p2131_p5, %p2130_p2 }
  0x43   : > { %p2126_p1 = pneg %p2125_p12 }
  0x45   : > { %p2133_p7 = pnand %p2132_p6, %p2126_p1 }
  0x47   : > { %2136 = shalt.err (!%p2133_p7)
}
  0x48   : > { %1969 = dma.hbm_to_vmem [thread:$0]  (!%p2376_p0), %s276_s7, 512, %s278_s8, %s2388_s27, %s2972_s22, %s2972_s22, %s2255_s13  }
  0x49   : > { %299 = sbr.rel (%p2405_p4) target bundleno = 1344 (0x540), region = 36  ;;  %s2446_s10 = sand.u32 (!%p2405_p4), 1, %s2235_s19  }
  0x4a   : > { %s2449_s12 = sshll.u32 (!%p2405_p4), %s2446_s10, 5  ;;  %s302_s29 = scalar_lea.sflag (!%p2405_p4), [#allocation3], %s2446_s10 }
  0x4b   : > { %s2453_s25 = scalar_lea.vmem (!%p2405_p4), [#allocation2], %s2449_s12 }
  0x4e   : > { %2214 = dma.done.wait (%p2349_p8), %s302_s29, 512  }
  0x4f   : > { %2216 = vsyncadd (%p2349_p8), %s302_s29, 4294966784  ;;  %s310_s7 = sand.u32 1, %s2329_s24   ;;  %s2461_s27 = scalar_lea.vmem [#allocation5], %s2449_s12 }
  0x50   : > { %s311_s11 = scalar_lea.sflag [#allocation6], %s310_s7 }
  0x51   : > { %2218 = dma.done.wait (%p2349_p8), %s311_s11, 1024  }
  0x52   : > { %2220 = vsyncadd (%p2349_p8), %s311_s11, 4294966272  ;;  %v2258_v0 = vmov 0.0   ;;  %vm2259_vm0 = vmmov 0   ;;  %vm426_vm1 = vcmask 1041409   ;;  %vm429_vm2 = vcmask 1042434   ;;  %p373_p8 = scmp.lt.s32.totalorder %s2243_s21, 1 }
  0x53   : > { %1910 = vmatprep.subr.mxu0 %v2258_v0  ;;  %1915 = vmatprep.subr.mxu1 %v2258_v0  ;;  %vm432_vm3 = vcmask 1043459   ;;  %vm435_vm4 = vcmask 1044484   ;;  %vm438_vm5 = vcmask 1045509   ;;  %vm441_vm6 = vcmask 1046534   ;;  %v401_v1 = vld [vmem:[%s2461_s27] sm:$0x1] }
  0x54   : > { %1912 = vmatprep.mubr.msk.f32.mxu0 %vm2259_vm0, %v2258_v0  ;;  %1917 = vmatprep.mubr.msk.f32.mxu1 %vm2259_vm0, %v2258_v0  ;;  %vm444_vm7 = vcmask 1047559   ;;  %v402_v2 = vld [vmem:[%s2461_s27 + $0x4] sm:$0x1]  ;;  %v403_v3 = vld [vmem:[%s2461_s27 + $0x8] sm:$0x1]  ;;  %vm468_vm8 = vcmask 261120  }
  0x55   : > { %v404_v4 = vld [vmem:[%s2461_s27 + $0xc] sm:$0x1]  ;;  %v405_v5 = vld [vmem:[%s2461_s27 + $0x10] sm:$0x1]  ;;  %v406_v6 = vld [vmem:[%s2461_s27 + $0x14] sm:$0x1] }
  0x56   : > { %v407_v7 = vld [vmem:[%s2461_s27 + $0x18] sm:$0x1]  ;;  %v408_v8 = vld [vmem:[%s2461_s27 + $0x1c] sm:$0x1]  ;;  %v454_v9 = vrot.slane %v402_v2, 7  ;;  %v456_v10 = vrot.slane %v403_v3, 6 }
  0x57   : > { %v458_v11 = vrot.slane %v404_v4, 5  ;;  %v460_v12 = vrot.slane %v405_v5, 4  ;;  %v462_v13 = vrot.slane %v406_v6, 3  ;;  %v385_v14 = vld [vmem:[%s2453_s25] sm:$0xf]  ;;  %v464_v16 = vrot.slane %v407_v7, 2 }
  0x58   : > { %v455_v15 = vsel %vm426_vm1, %v454_v9, %v401_v1  ;;  %v466_v17 = vrot.slane %v408_v8, 1  ;;  %v386_v18 = vld [vmem:[%s2453_s25 + $0x4] sm:$0xf]  ;;  %v387_v19 = vld [vmem:[%s2453_s25 + $0x8] sm:$0xf]  ;;  %s374_s24 = scalar_select %p373_p8, %s2243_s21, 1 }
  0x59   : > { %v457_v20 = vsel %vm429_vm2, %v456_v10, %v455_v15  ;;  %v388_v21 = vld [vmem:[%s2453_s25 + $0xc] sm:$0xf]  ;;  %v389_v22 = vld [vmem:[%s2453_s25 + $0x10] sm:$0xf]  ;;  %v390_v23 = vld [vmem:[%s2453_s25 + $0x14] sm:$0xf] }
  0x5a   : > { %v459_v24 = vsel %vm432_vm3, %v458_v11, %v457_v20  ;;  %v391_v25 = vld [vmem:[%s2453_s25 + $0x18] sm:$0xf]  ;;  %v392_v26 = vld [vmem:[%s2453_s25 + $0x1c] sm:$0xf]  ;;  %v2492_v27 = vmul.f32 0.17677669, %v385_v14 }
  0x5b   : > { %v461_v28 = vsel %vm435_vm4, %v460_v12, %v459_v24  ;;  %v2495_v29 = vmul.f32 0.17677669, %v386_v18  ;;  %v2497_v30 = vmul.f32 0.17677669, %v387_v19  ;;  %v2499_v31 = vmul.f32 0.17677669, %v388_v21 }
  0x5c   : > { %v463_v32 = vsel %vm438_vm5, %v462_v13, %v461_v28  ;;  %v2502_v33 = vmul.f32 0.17677669, %v389_v22  ;;  %v2504_v34 = vmul.f32 0.17677669, %v390_v23  ;;  %v2506_v35 = vmul.f32 0.17677669, %v391_v25 }
  0x5d   : > { %v465_v36 = vsel %vm441_vm6, %v464_v16, %v463_v32  ;;  %v2509_v37 = vmul.f32 0.17677669, %v392_v26  ;;  %v425_v38 = vrot.slane %v2495_v29, 7  ;;  %v428_v39 = vrot.slane %v2497_v30, 6  ;;  %s1865_s30 = sshll.u32 %s374_s24, 1  ;;  %s2549_s22 = scalar_lea.vmem [#allocation7], %s2449_s12 }
  0x5e   : > { %v467_v40 = vsel %vm444_vm7, %v466_v17, %v465_v36  ;;  %v431_v41 = vrot.slane %v2499_v31, 5  ;;  %v434_v42 = vrot.slane %v2502_v33, 4  ;;  %v437_v44 = vrot.slane %v2504_v34, 3  ;;  %s379_s17 = scalar_lea.vmem %s2948_s3, %s1865_s30  ;;  %v409_v4 = vld [vmem:[%s2549_s22] sm:$0x1]  ;;  %s2646_s26 = scalar_lea.vmem [#allocation9], %s2449_s12 }
  0x5f   : > { %1911 = vmatpush3.xpose.msk.msra.mxu0 %vm468_vm8, %v467_v40  ;;  %v427_v43 = vsel %vm426_vm1, %v425_v38, %v2492_v27  ;;  %v440_v46 = vrot.slane %v2506_v35, 2  ;;  %v443_v48 = vrot.slane %v2509_v37, 1  ;;  %v383_v53 = vld [vmem:[%s379_s17] sm:$0x3]  ;;  %v2260_v54 = vmov 0   ;;  %s2686_s8 = scalar_lea.vmem [#allocation8], %s2449_s12 }
  0x60   : > { %v430_v45 = vsel %vm429_vm2, %v428_v39, %v427_v43  ;;  %1925 = vmatprep.subr.mxu0 %v2258_v0  ;;  %vm384_vm9 = vnez %v383_v53  ;;  %vm547_vm11 = vcmask 64512   ;;  %v410_v5 = vld [vmem:[%s2549_s22 + $0x4] sm:$0x1]  ;;  %v411_v6 = vld [vmem:[%s2549_s22 + $0x8] sm:$0x1]  ;;  %vm714_vm12 = vcmask 253952  }
  0x61   : > { %v433_v47 = vsel %vm432_vm3, %v431_v41, %v430_v45  ;;  %v543_v55 = vsel %vm384_vm9, 16843009, %v2260_v54  ;;  %v412_v7 = vld [vmem:[%s2549_s22 + $0xc] sm:$0x1]  ;;  %v413_v8 = vld [vmem:[%s2549_s22 + $0x10] sm:$0x1] }
  0x62   : > { %v436_v49 = vsel %vm435_vm4, %v434_v42, %v433_v47  ;;  %v544_v56 = vunpack.c.0.s8 %v543_v55  ;;  %v414_v9 = vld [vmem:[%s2549_s22 + $0x14] sm:$0x1]  ;;  %v415_v10 = vld [vmem:[%s2549_s22 + $0x18] sm:$0x1]  ;;  %v567_v11 = vrot.slane %v410_v5, 7  ;;  %v569_v12 = vrot.slane %v411_v6, 6 }
  0x63   : > { %v439_v50 = vsel %vm438_vm5, %v437_v44, %v436_v49  ;;  %v416_v13 = vld [vmem:[%s2549_s22 + $0x1c] sm:$0x1]  ;;  %v571_v14 = vrot.slane %v412_v7, 5  ;;  %v573_v15 = vrot.slane %v413_v8, 4  ;;  %v575_v17 = vrot.slane %v414_v9, 3  ;;  %s1892_s28 = sshll.u32 %s2243_s21, 9 }
  0x64   : > { %v442_v51 = vsel %vm441_vm6, %v440_v46, %v439_v50  ;;  %vm2537_vm10 = vcmp.ne.s32.totalorder %v544_v56, 0  ;;  %v568_v16 = vsel %vm426_vm1, %v567_v11, %v409_v4  ;;  %v577_v19 = vrot.slane %v415_v10, 2  ;;  %v724_v26 = vld [vmem:[%s2461_s27 + $0x5] sm:$0x1]  ;;  %v725_v28 = vld [vmem:[%s2461_s27 + $0x9] sm:$0x1]  ;;  %s2795_s16 = scalar_lea.hbm %s2950_s5, %s1892_s28 }
  0x65   : > { %v445_v52 = vsel %vm444_vm7, %v443_v48, %v442_v51  ;;  %v570_v18 = vsel %vm429_vm2, %v569_v12, %v568_v16  ;;  %v579_v21 = vrot.slane %v416_v13, 1  ;;  %v761_v32 = vrot.slane %v724_v26, 7  ;;  %v723_v36 = vld [vmem:[%s2461_s27 + $0x1] sm:$0x1]  ;;  %v1026_v38 = vld [vmem:[%s2461_s27 + $0x6] sm:$0x1] }
  0x66   : > { %1913 = vmatmul.mubr.msk.f32.vlgmr.msra.gmra.mxu0 %vm468_vm8, %v445_v52  ;;  %v572_v20 = vsel %vm432_vm3, %v571_v14, %v570_v18  ;;  %v726_v39 = vld [vmem:[%s2461_s27 + $0xd] sm:$0x1]  ;;  %v763_v40 = vrot.slane %v725_v28, 6  ;;  %v739_v42 = vrot.slane %v2492_v27, 1  ;;  %v1027_v43 = vld [vmem:[%s2461_s27 + $0xa] sm:$0x1] }
  0x67   : > { %1927 = vmatprep.mubr.msk.f32.mxu0 %vm2259_vm0, %v2258_v0  ;;  %v574_v22 = vsel %vm435_vm4, %v573_v15, %v572_v20  ;;  %v762_v41 = vsel %vm426_vm1, %v761_v32, %v723_v36  ;;  %v1063_v44 = vrot.slane %v1026_v38, 7  ;;  %v1025_v45 = vld [vmem:[%s2461_s27 + $0x2] sm:$0x1]  ;;  %v727_v46 = vld [vmem:[%s2461_s27 + $0x11] sm:$0x1]  ;;  %v765_v47 = vrot.slane %v726_v39, 5 }
  0x68   : > { %v576_v23 = vsel %vm438_vm5, %v575_v17, %v574_v22  ;;  %v1328_v48 = vld [vmem:[%s2461_s27 + $0x7] sm:$0x1]  ;;  %v764_v49 = vsel %vm429_vm2, %v763_v40, %v762_v41  ;;  %v741_v50 = vrot.slane %v2497_v30, 7  ;;  %v1065_v51 = vrot.slane %v1027_v43, 6  ;;  %v728_v53 = vld [vmem:[%s2461_s27 + $0x15] sm:$0x1] }
  0x69   : > { %v578_v24 = vsel %vm441_vm6, %v577_v19, %v576_v23  ;;  %v740_v54 = vsel %vm426_vm1, %v2495_v29, %v739_v42  ;;  %v1028_v55 = vld [vmem:[%s2461_s27 + $0xe] sm:$0x1]  ;;  %v1064_v56 = vsel %vm426_vm1, %v1063_v44, %v1025_v45  ;;  %v729_v4 = vld [vmem:[%s2461_s27 + $0x19] sm:$0x1]  ;;  %v769_v5 = vrot.slane %v728_v53, 3  ;;  %s1667_s1 = sshll.u32 %s2646_s26, 4  ;;  %s2798_s1 = int_to_ptr.vmem [resolvable:$true] %s1667_s1 }
  0x6a   : > { %v580_v25 = vsel %vm444_vm7, %v579_v21, %v578_v24  ;;  %v742_v6 = vsel %vm429_vm2, %v741_v50, %v740_v54  ;;  %v1029_v7 = vld [vmem:[%s2461_s27 + $0x12] sm:$0x1]  ;;  %v1066_v8 = vsel %vm429_vm2, %v1065_v51, %v1064_v56  ;;  %v1067_v9 = vrot.slane %v1028_v55, 5  ;;  %v1330_v11 = vld [vmem:[%s2461_s27 + $0xf] sm:$0x1]  ;;  %s1635_s18 = scalar_lea.sflag [#allocation10], %s2446_s10 }
  0x6b   : > { %1916 = vmatpush3.msra.mxu1 %v580_v25  ;;  %v1343_v13 = vrot.slane %v2492_v27, 3  ;;  %v1344_v14 = vrot.slane %v2495_v29, 2  ;;  %v745_v16 = vrot.slane %v2502_v33, 5  ;;  %v771_v18 = vrot.slane %v729_v4, 2  ;;  %v1030_v20 = vld [vmem:[%s2461_s27 + $0x16] sm:$0x1] }
  0x6c   : > { %1920 = vmatprep.subr.mxu1 %v2258_v0  ;;  %v1069_v21 = vrot.slane %v1029_v7, 4  ;;  %v1045_v22 = vrot.slane %v2499_v31, 7  ;;  %v730_v23 = vld [vmem:[%s2461_s27 + $0x1d] sm:$0x1]  ;;  %v1068_v24 = vsel %vm432_vm3, %v1067_v9, %v1066_v8  ;;  %v1369_v25 = vrot.slane %v1330_v11, 5  ;;  %s2137_s12 = scalar_lea.vmem %s2798_s1, 512 }
  0x6d   : > { %v1346_v26 = vrot.slane %v2497_v30, 1  ;;  %v747_v32 = vrot.slane %v2504_v34, 4  ;;  %v1345_v38 = vsel %vm426_vm1, %v1344_v14, %v1343_v13  ;;  %v1031_v40 = vld [vmem:[%s2461_s27 + $0x1a] sm:$0x1]  ;;  %v1071_v41 = vrot.slane %v1030_v20, 3  ;;  %p2138_p0 = scmp.ne.s32.totalorder %s2798_s1, %s2137_s12  ;;  %s2262_s29 = smov [#allocation9]  }
  0x6e   : > { %v1047_v42 = vrot.slane %v2502_v33, 6  ;;  %v773_v43 = vrot.slane %v730_v23, 1  ;;  %v1070_v44 = vsel %vm435_vm4, %v1069_v21, %v1068_v24  ;;  %v1332_v45 = vld [vmem:[%s2461_s27 + $0x17] sm:$0x1]  ;;  %v1073_v53 = vrot.slane %v1031_v40, 2  ;;  %s2141_s25 = sshll.u32 %s2262_s29, 4  ;;  %s2142_s25 = int_to_ptr.vmem [resolvable:$false] %s2141_s25 }
  0x6f   : > { %v1347_v50 = vsel %vm429_vm2, %v1346_v26, %v1345_v38  ;;  %v1049_v54 = vrot.slane %v2504_v34, 5  ;;  %v1072_v55 = vsel %vm438_vm5, %v1071_v41, %v1070_v44  ;;  %v1051_v7 = vrot.slane %v2506_v35, 4  ;;  %v1334_v9 = vld [vmem:[%s2461_s27 + $0x1f] sm:$0x1]  ;;  %p2139_p3 = pnand %p2138_p0, %p2353_p9  ;;  %s2143_s7 = scalar_lea.vmem %s2142_s25, 1024 }
  0x70   : > { %v1351_v11 = vrot.slane %v2504_v34, 6  ;;  %v1053_v34 = vrot.slane %v2509_v37, 3  ;;  %v1355_v20 = vrot.slane %v2509_v37, 4  ;;  %v2261_v23 = vmov 1966171168   ;;  %p2144_p10 = scmp.lt.s32.totalorder %s2798_s1, %s2142_s25  ;;  %p2145_p13 = scmp.lt.s32.totalorder %s2143_s7, %s2137_s12 }
  0x71   : > { %v659_v24 = vunpack.c.l.s4 %v2261_v23  ;;  %p2140_p4 = pneg %p2139_p3 }
  0x72   : > { %p2146_p12 = por %p2145_p13, %p2144_p10 }
  0x74   : > { %p2147_p1 = pnand %p2146_p12, %p2140_p4 }
 0x126   : > { %v539_v58 = vpop.f32.mrf.mxu0 }
 0x127   : > { %v546_v59 = vsel %vm2537_vm10, -10000.0, %v539_v58  ;;  %v1041_v58 = vrot.slane %v2492_v27, 2 }
 0x128   : > { %v1914_v60 = vpop.f32.mrf.mxu0  ;;  %v548_v61 = vsel %vm547_vm11, %v546_v59, -inf }
 0x129   : > { %549 = vmax.xlane.f32.xlu0 %v548_v61  ;;  %v767_v60 = vrot.slane %v727_v46, 4  ;;  %v1329_v61 = vld [vmem:[%s2461_s27 + $0xb] sm:$0x1] }
 0x12a   : > { %v1367_v12 = vrot.slane %v1329_v61, 6 }
 0x1b2   : > { %v550_v62 = vpop.xlane.xlu0 %549 }
 0x1b3   : > { %v551_v63 = vsub.f32 %v546_v59, %v550_v62  ;;  %v1042_v59 = vrot.slane %v2495_v29, 1  ;;  %v1365_v62 = vrot.slane %v1328_v48, 7  ;;  %v1331_v29 = vld [vmem:[%s2461_s27 + $0x13] sm:$0x1]  ;;  %v749_v48 = vrot.slane %v2506_v35, 3 }
 0x1b4   : > { %v1371_v46 = vrot.slane %v1331_v29, 4 }
 0x1b5   : > { %v552_v1 = vmul.f32 1.442695, %v551_v63  ;;  %v766_v63 = vsel %vm432_vm3, %v765_v47, %v764_v49  ;;  %v1043_v10 = vsel %vm426_vm1, %v1042_v59, %v1041_v58  ;;  %v1333_v58 = vld [vmem:[%s2461_s27 + $0x1b] sm:$0x1]  ;;  %v1373_v59 = vrot.slane %v1332_v45, 3 }
 0x1b6   : > { %v768_v15 = vsel %vm435_vm4, %v767_v60, %v766_v63  ;;  %v1044_v27 = vsel %vm429_vm2, %v2497_v30, %v1043_v10  ;;  %v1349_v60 = vrot.slane %v2502_v33, 7  ;;  %v751_v63 = vrot.slane %v2509_v37, 2 }
 0x1b7   : > { %2037 = vpow2.f32 %v552_v1  ;;  %v743_v1 = vrot.slane %v2499_v31, 6  ;;  %v770_v28 = vsel %vm438_vm5, %v769_v5, %v768_v15  ;;  %v1046_v30 = vsel %vm432_vm3, %v1045_v22, %v1044_v27 }
 0x1b8   : > { %v772_v47 = vsel %vm441_vm6, %v771_v18, %v770_v28  ;;  %v1048_v56 = vsel %vm435_vm4, %v1047_v42, %v1046_v30  ;;  %v1074_v33 = vsel %vm441_vm6, %v1073_v53, %v1072_v55  ;;  %v1375_v10 = vrot.slane %v1333_v58, 2 }
 0x1b9   : > { %v744_v19 = vsel %vm432_vm3, %v743_v1, %v742_v6  ;;  %v1050_v8 = vsel %vm438_vm5, %v1049_v54, %v1048_v56  ;;  %v1377_v15 = vrot.slane %v1334_v9, 1  ;;  %v661_v37 = vlaneseq }
 0x1ba   : > { %v746_v39 = vsel %vm435_vm4, %v745_v16, %v744_v19  ;;  %v1052_v14 = vsel %vm441_vm6, %v1051_v7, %v1050_v8  ;;  %v1353_v16 = vrot.slane %v2506_v35, 5  ;;  %v660_v27 = vunpack.c.0.s8 %v659_v24 }
 0x1bb   : > { %v748_v51 = vsel %vm438_vm5, %v747_v32, %v746_v39  ;;  %v1054_v19 = vsel %vm444_vm7, %v1053_v34, %v1052_v14  ;;  %v662_v29 = vshrl.u32 %v661_v37, 7  ;;  %v731_v34 = vld [vmem:[%s2549_s22 + $0x1] sm:$0x1]  ;;  %v735_v14 = vld [vmem:[%s2549_s22 + $0x11] sm:$0x1] }
 0x1bc   : > { %v750_v5 = vsel %vm441_vm6, %v749_v48, %v748_v51 }
 0x1c4   : > { %v2544_v2 = vpop.eup %2037 }
 0x1c5   : > { %v554_v3 = vsel %vm547_vm11, %v2544_v2, 0.0 }
 0x1c6   : > { %555 = vadd.xlane.f32.xlu0 %v554_v3  ;;  %v1327_v3 = vld [vmem:[%s2461_s27 + $0x3] sm:$0x1] }
 0x1c7   : > { %v1366_v17 = vsel %vm426_vm1, %v1365_v62, %v1327_v3  ;;  %v774_v62 = vsel %vm444_vm7, %v773_v43, %v772_v47  ;;  %v1348_v3 = vsel %vm432_vm3, %v2499_v31, %v1347_v50 }
 0x1c8   : > { %v1368_v36 = vsel %vm429_vm2, %v1367_v12, %v1366_v17  ;;  %v752_v12 = vsel %vm444_vm7, %v751_v63, %v750_v5 }
 0x1c9   : > { %v1370_v49 = vsel %vm432_vm3, %v1369_v25, %v1368_v36  ;;  %v2678_v25 = vsub.s32 %v660_v27, %v662_v29 }
 0x1ca   : > { %v1372_v1 = vsel %vm435_vm4, %v1371_v46, %v1370_v49 }
 0x1cb   : > { %v1374_v31 = vsel %vm438_vm5, %v1373_v59, %v1372_v1 }
 0x1cc   : > { %v1376_v17 = vsel %vm441_vm6, %v1375_v10, %v1374_v31  ;;  %v732_v31 = vld [vmem:[%s2549_s22 + $0x5] sm:$0x1] }
 0x1cd   : > { %v1378_v21 = vsel %vm444_vm7, %v1377_v15, %v1376_v17  ;;  %v736_v15 = vld [vmem:[%s2549_s22 + $0x15] sm:$0x1] }
 0x24f   : > { %v556_v52 = vpop.xlane.xlu0 %555 }
 0x250   : > { %2039 = vrcp.f32 %v556_v52  ;;  %v1032_v52 = vld [vmem:[%s2461_s27 + $0x1e] sm:$0x1] }
 0x251   : > { %v1075_v6 = vrot.slane %v1032_v52, 1 }
 0x253   : > { %v1076_v13 = vsel %vm444_vm7, %v1075_v6, %v1074_v33 }
 0x25d   : > { %v2040_v61 = vpop.eup %2039 }
 0x25e   : > { %v558_v4 = vmul.f32 %v2040_v61, %v2544_v2  ;;  %v1350_v2 = vsel %vm435_vm4, %v1349_v60, %v1348_v3 }
 0x25f   : > { %v1352_v18 = vsel %vm438_vm5, %v1351_v11, %v1350_v2  ;;  %v733_v2 = vld [vmem:[%s2549_s22 + $0x9] sm:$0x1] }
 0x260   : > { %1918 = vmatmul.mubr.msk.f32.vlgmr.msra.gmra.mxu1 %vm547_vm11, %v558_v4  ;;  %655 = vst.msk [vmem:[%s2646_s26] sm:$0xff] %vm547_vm11, %v558_v4  ;;  %v1354_v35 = vsel %vm441_vm6, %v1353_v16, %v1352_v18  ;;  %v737_v16 = vld [vmem:[%s2549_s22 + $0x19] sm:$0x1]  ;;  %v738_v18 = vld [vmem:[%s2549_s22 + $0x1d] sm:$0x1] }
 0x261   : > { %1921 = vmatpush3.xpose.msk.msra.mxu1 %vm468_vm8, %v774_v62  ;;  %1922 = vmatprep.mubr.msk.f32.mxu1 %vm2259_vm0, %v2258_v0  ;;  %v1356_v22 = vsel %vm444_vm7, %v1355_v20, %v1354_v35  ;;  %v877_v35 = vrot.slane %v736_v15, 3  ;;  %v879_v23 = vrot.slane %v737_v16, 2  ;;  %v881_v37 = vrot.slane %v738_v18, 1 }
 0x262   : > { %1930 = vmatprep.subr.mxu1 %v2258_v0 }
 0x264   : > { %1923 = vmatmul.mubr.msk.f32.vlgmr.msra.gmra.mxu1 %vm468_vm8, %v752_v12  ;;  %v869_v12 = vrot.slane %v732_v31, 7 }
 0x265   : > { %1931 = vmatpush3.xpose.msk.msra.mxu1 %vm468_vm8, %v1076_v13  ;;  %1932 = vmatprep.mubr.msk.f32.mxu1 %vm2259_vm0, %v2258_v0  ;;  %v734_v13 = vld [vmem:[%s2549_s22 + $0xd] sm:$0x1] }
 0x266   : > { %1940 = vmatprep.subr.mxu1 %v2258_v0  ;;  %v870_v17 = vsel %vm426_vm1, %v869_v12, %v731_v34  ;;  %v873_v20 = vrot.slane %v734_v13, 5  ;;  %v1342_v34 = vld [vmem:[%s2549_s22 + $0x1f] sm:$0x1] }
 0x267   : > { %v1485_v18 = vrot.slane %v1342_v34, 1 }
 0x268   : > { %1933 = vmatmul.mubr.msk.f32.vlgmr.msra.gmra.mxu1 %vm468_vm8, %v1054_v19  ;;  %v871_v19 = vrot.slane %v733_v2, 6 }
 0x269   : > { %1941 = vmatpush3.xpose.msk.msra.mxu1 %vm468_vm8, %v1378_v21  ;;  %1942 = vmatprep.mubr.msk.f32.mxu1 %vm2259_vm0, %v2258_v0  ;;  %v875_v21 = vrot.slane %v735_v14, 4 }
 0x26c   : > { %1943 = vmatmul.mubr.msk.f32.vlgmr.msra.gmra.mxu1 %vm468_vm8, %v1356_v22  ;;  %v872_v22 = vsel %vm429_vm2, %v871_v19, %v870_v17 }
 0x26d   : > { %v874_v24 = vsel %vm432_vm3, %v873_v20, %v872_v22 }
 0x26e   : > { %v876_v27 = vsel %vm435_vm4, %v875_v21, %v874_v24 }
 0x26f   : > { %v878_v29 = vsel %vm438_vm5, %v877_v35, %v876_v27 }
 0x320   : > { %v651_v26 = vpop.f32.mrf.mxu1 }
 0x321   : > { %v657_v28 = vcombine.high %v651_v26, %v651_v26  ;;  %v664_v32 = vrot.slane %v651_v26, %v2678_v25  ;;  %v880_v26 = vsel %vm441_vm6, %v879_v23, %v878_v29 }
 0x322   : > { %v1919_v36 = vpop.f32.mrf.mxu1 }
 0x323   : > { %v671_v38 = vrot.slane %v657_v28, %v2678_v25  ;;  %v672_v39 = vcombine.high %v664_v32, %v664_v32  ;;  %v680_v40 = vrot.slane %v664_v32, %v2678_v25  ;;  %v882_v28 = vsel %vm444_vm7, %v881_v37, %v880_v26  ;;  %v1034_v32 = vld [vmem:[%s2549_s22 + $0x6] sm:$0x1]  ;;  %v1035_v36 = vld [vmem:[%s2549_s22 + $0xa] sm:$0x1] }
 0x324   : > { %v845_v41 = vpop.f32.mrf.mxu1  ;;  %1926 = vmatpush3.msra.mxu0 %v882_v28 }
 0x325   : > { %v673_v42 = vcombine.high %v671_v38, %v671_v38  ;;  %v687_v43 = vrot.slane %v671_v38, %v2678_v25  ;;  %v694_v44 = vrot.slane %v672_v39, %v2678_v25  ;;  %v702_v30 = vcombine.high %v680_v40, %v680_v40  ;;  %715 = vst.msk [vmem:[%s2686_s8] sm:$0x1] %vm714_vm12, %v680_v40  ;;  %v1033_v39 = vld [vmem:[%s2549_s22 + $0x2] sm:$0x1]  ;;  %v1336_v40 = vld [vmem:[%s2549_s22 + $0x7] sm:$0x1] }
 0x326   : > { %v849_v45 = vsel %vm2537_vm10, -10000.0, %v845_v41  ;;  %v1924_v46 = vpop.f32.mrf.mxu1  ;;  %1935 = vmatprep.subr.mxu0 %v2258_v0  ;;  %v1171_v38 = vrot.slane %v1034_v32, 7  ;;  %v1036_v41 = vld [vmem:[%s2549_s22 + $0xe] sm:$0x1] }
 0x327   : > { %v701_v47 = vrot.slane %v673_v42, %v2678_v25  ;;  %v703_v48 = vcombine.high %v687_v43, %v687_v43  ;;  %v704_v49 = vcombine.high %v694_v44, %v694_v44  ;;  %716 = vst.msk [vmem:[%s2686_s8 + $0x4] sm:$0x1] %vm714_vm12, %v694_v44  ;;  %717 = vst.msk [vmem:[%s2686_s8 + $0x8] sm:$0x1] %vm714_vm12, %v702_v30  ;;  %v850_v50 = vsel %vm547_vm11, %v849_v45, -inf }
 0x328   : > { %719 = vst.msk [vmem:[%s2686_s8 + $0x10] sm:$0x1] %vm714_vm12, %v687_v43  ;;  %851 = vmax.xlane.f32.xlu1 %v850_v50  ;;  %v1147_v51 = vpop.f32.mrf.mxu1  ;;  %v1173_v42 = vrot.slane %v1035_v36, 6  ;;  %v1172_v43 = vsel %vm426_vm1, %v1171_v38, %v1033_v39  ;;  %v1337_v44 = vld [vmem:[%s2549_s22 + $0xb] sm:$0x1]  ;;  %v1473_v30 = vrot.slane %v1336_v40, 7 }
 0x329   : > { %v705_v52 = vcombine.high %v701_v47, %v701_v47  ;;  %718 = vst.msk [vmem:[%s2686_s8 + $0xc] sm:$0x1] %vm714_vm12, %v704_v49  ;;  %720 = vst.msk [vmem:[%s2686_s8 + $0x14] sm:$0x1] %vm714_vm12, %v701_v47  ;;  %v1151_v53 = vsel %vm2537_vm10, -10000.0, %v1147_v51  ;;  %v1175_v47 = vrot.slane %v1036_v41, 5 }
 0x32a   : > { %721 = vst.msk [vmem:[%s2686_s8 + $0x18] sm:$0x1] %vm714_vm12, %v703_v48  ;;  %v1934_v54 = vpop.f32.mrf.mxu1  ;;  %v1152_v55 = vsel %vm547_vm11, %v1151_v53, -inf  ;;  %v1037_v46 = vld [vmem:[%s2549_s22 + $0x12] sm:$0x1]  ;;  %v1174_v49 = vsel %vm429_vm2, %v1173_v42, %v1172_v43  ;;  %v1475_v51 = vrot.slane %v1337_v44, 6 }
 0x32b   : > { %722 = vst.msk [vmem:[%s2686_s8 + $0x1c] sm:$0x1] %vm714_vm12, %v705_v52  ;;  %v1338_v50 = vld [vmem:[%s2549_s22 + $0xf] sm:$0x1]  ;;  %v1177_v54 = vrot.slane %v1037_v46, 4 }
 0x32c   : > { %1153 = vmax.xlane.f32.xlu1 %v1152_v55  ;;  %v1449_v56 = vpop.f32.mrf.mxu1  ;;  %v1176_v55 = vsel %vm432_vm3, %v1175_v47, %v1174_v49 }
 0x32d   : > { %v1453_v58 = vsel %vm2537_vm10, -10000.0, %v1449_v56  ;;  %v1339_v56 = vld [vmem:[%s2549_s22 + $0x13] sm:$0x1] }
 0x32e   : > { %v1944_v59 = vpop.f32.mrf.mxu1  ;;  %v1454_v60 = vsel %vm547_vm11, %v1453_v58, -inf }
 0x32f   : > { %1455 = vmax.xlane.f32.xlu0 %v1454_v60 }
 0x3b1   : > { %v852_v61 = vpop.xlane.xlu1 %851 }
 0x3b2   : > { %v853_v62 = vsub.f32 %v849_v45, %v852_v61  ;;  %v1335_v45 = vld [vmem:[%s2549_s22 + $0x3] sm:$0x1]  ;;  %v1039_v61 = vld [vmem:[%s2549_s22 + $0x1a] sm:$0x1] }
 0x3b3   : > { %v1474_v52 = vsel %vm426_vm1, %v1473_v30, %v1335_v45 }
 0x3b4   : > { %v854_v63 = vmul.f32 1.442695, %v853_v62  ;;  %v1476_v60 = vsel %vm429_vm2, %v1475_v51, %v1474_v52 }
 0x3b5   : > { %v1154_v1 = vpop.xlane.xlu1 %1153 }
 0x3b6   : > { %2041 = vpow2.f32 %v854_v63  ;;  %v1155_v3 = vsub.f32 %v1151_v53, %v1154_v1  ;;  %v1038_v53 = vld [vmem:[%s2549_s22 + $0x16] sm:$0x1]  ;;  %v1178_v63 = vsel %vm435_vm4, %v1177_v54, %v1176_v55  ;;  %v1340_v1 = vld [vmem:[%s2549_s22 + $0x17] sm:$0x1] }
 0x3b7   : > { %v1179_v62 = vrot.slane %v1038_v53, 3 }
 0x3b8   : > { %v1156_v4 = vmul.f32 1.442695, %v1155_v3  ;;  %v1456_v5 = vpop.xlane.xlu0 %1455  ;;  %v1479_v3 = vrot.slane %v1339_v56, 4 }
 0x3b9   : > { %v1457_v6 = vsub.f32 %v1453_v58, %v1456_v5  ;;  %v1477_v58 = vrot.slane %v1338_v50, 5 }
 0x3ba   : > { %2043 = vpow2.f32 %v1156_v4 }
 0x3bb   : > { %v1458_v57 = vmul.f32 1.442695, %v1457_v6  ;;  %v1478_v5 = vsel %vm432_vm3, %v1477_v58, %v1476_v60  ;;  %v1040_v6 = vld [vmem:[%s2549_s22 + $0x1e] sm:$0x1] }
 0x3bc   : > { %v1480_v31 = vsel %vm435_vm4, %v1479_v3, %v1478_v5  ;;  %v1183_v2 = vrot.slane %v1040_v6, 1 }
 0x3bd   : > { %2045 = vpow2.f32 %v1458_v57  ;;  %v1181_v57 = vrot.slane %v1039_v61, 2 }
 0x3c3   : > { %v2714_v7 = vpop.eup %2041 }
 0x3c4   : > { %v856_v33 = vsel %vm547_vm11, %v2714_v7, 0.0 }
 0x3c5   : > { %857 = vadd.xlane.f32.xlu1 %v856_v33  ;;  %v1180_v33 = vsel %vm438_vm5, %v1179_v62, %v1178_v63 }
 0x3c6   : > { %v1182_v12 = vsel %vm441_vm6, %v1181_v57, %v1180_v33 }
 0x3c7   : > { %v2718_v8 = vpop.eup %2043  ;;  %v1184_v17 = vsel %vm444_vm7, %v1183_v2, %v1182_v12 }
 0x3c8   : > { %v1158_v9 = vsel %vm547_vm11, %v2718_v8, 0.0 }
 0x3c9   : > { %1159 = vadd.xlane.f32.xlu0 %v1158_v9  ;;  %v1341_v9 = vld [vmem:[%s2549_s22 + $0x1b] sm:$0x1] }
 0x3ca   : > { %v2722_v10 = vpop.eup %2045  ;;  %v1483_v13 = vrot.slane %v1341_v9, 2 }
 0x3cb   : > { %v1460_v11 = vsel %vm547_vm11, %v2722_v10, 0.0 }
 0x3cc   : > { %1461 = vadd.xlane.f32.xlu1 %v1460_v11  ;;  %v1481_v11 = vrot.slane %v1340_v1, 3 }
 0x3ce   : > { %v1482_v14 = vsel %vm438_vm5, %v1481_v11, %v1480_v31 }
 0x3cf   : > { %v1484_v19 = vsel %vm441_vm6, %v1483_v13, %v1482_v14 }
 0x3d0   : > { %v1486_v21 = vsel %vm444_vm7, %v1485_v18, %v1484_v19 }
 0x44e   : > { %v858_v48 = vpop.xlane.xlu1 %857 }
 0x44f   : > { %2047 = vrcp.f32 %v858_v48 }
 0x452   : > { %v1160_v59 = vpop.xlane.xlu0 %1159 }
 0x453   : > { %2049 = vrcp.f32 %v1160_v59 }
 0x455   : > { %v1462_v4 = vpop.xlane.xlu1 %1461 }
 0x456   : > { %2051 = vrcp.f32 %v1462_v4 }
 0x45c   : > { %v2048_v15 = vpop.eup %2047 }
 0x45d   : > { %v860_v16 = vmul.f32 %v2048_v15, %v2714_v7 }
 0x45f   : > { %1928 = vmatmul.mubr.msk.f32.vlgmr.msra.gmra.mxu0 %vm547_vm11, %v860_v16  ;;  %1872 = vst.msk [vmem:[%s2646_s26 + $0x8] sm:$0xff] %vm547_vm11, %v860_v16 }
 0x460   : > { %v2050_v20 = vpop.eup %2049  ;;  %1936 = vmatpush3.msra.mxu0 %v1184_v17  ;;  %1937 = vmatprep.mubr.msk.f32.mxu0 %vm2259_vm0, %v2258_v0 }
 0x461   : > { %1945 = vmatprep.subr.mxu0 %v2258_v0  ;;  %v1162_v7 = vmul.f32 %v2050_v20, %v2718_v8 }
 0x463   : > { %v2052_v35 = vpop.eup %2051  ;;  %1938 = vmatmul.mubr.msk.f32.vlgmr.msra.gmra.mxu0 %vm547_vm11, %v1162_v7  ;;  %1876 = vst.msk [vmem:[%s2646_s26 + $0x10] sm:$0xff] %vm547_vm11, %v1162_v7 }
 0x464   : > { %1946 = vmatpush3.msra.mxu0 %v1486_v21  ;;  %1947 = vmatprep.mubr.msk.f32.mxu0 %vm2259_vm0, %v2258_v0  ;;  %v1464_v22 = vmul.f32 %v2052_v35, %v2722_v10 }
 0x466   : > { %1880 = vst.msk [vmem:[%s2646_s26 + $0x18] sm:$0xff] %vm547_vm11, %v1464_v22 }
 0x467   : > { %1948 = vmatmul.mubr.msk.f32.vlgmr.msra.gmra.mxu0 %vm547_vm11, %v1464_v22 }
 0x468   : > { %2150 = shalt.err (!%p2147_p1)
}
 0x469   : > { %s2151_s11 = scalar_lea.hbm %s2795_s16, 512  ;;  %s2155_s30 = scalar_lea.hbm %s2950_s5, 1024 }
 0x46a   : > { %p2152_p2 = scmp.ne.s32.totalorder %s2795_s16, %s2151_s11  ;;  %p2156_p7 = scmp.lt.s32.totalorder %s2795_s16, %s2950_s5 }
 0x46b   : > { %p2157_p8 = scmp.lt.s32.totalorder %s2155_s30, %s2151_s11 }
 0x46c   : > { %p2153_p5 = pnand %p2152_p2, %p2353_p9 }
 0x46d   : > { %p2158_p0 = por %p2157_p8, %p2156_p7 }
 0x46e   : > { %p2154_p6 = pneg %p2153_p5 }
 0x470   : > { %p2159_p3 = pnand %p2158_p0, %p2154_p6 }
 0x472   : > { %2162 = shalt.err (!%p2159_p3)
}
 0x473   : > { %s2263_s17 = smov 128   ;;  %s2264_s22 = smov 8  }
 0x474   : > { %1957 = dma.vmem_to_hbm [thread:$0]  (%p2353_p9), %s2798_s1, 512, %s2795_s16, %s1635_s18, %s2263_s17, %s2263_s17, %s2264_s22  }
 0x475   : > { %s1650_s26 = sshll.u32 %s2686_s8, 4  ;;  %s2887_s16 = scalar_lea.hbm %s2949_s4, %s1892_s28  ;;  %s2889_s26 = int_to_ptr.vmem [resolvable:$true] %s1650_s26 }
 0x476   : > { %s1630_s21 = scalar_lea.sflag [#allocation4], %s2446_s10  ;;  %s2163_s1 = scalar_lea.vmem %s2889_s26, 512 }
 0x477   : > { %p2164_p4 = scmp.ne.s32.totalorder %s2889_s26, %s2163_s1  ;;  %s2265_s28 = smov [#allocation8]  }
 0x478   : > { %s2167_s18 = sshll.u32 %s2265_s28, 4  ;;  %s2168_s18 = int_to_ptr.vmem [resolvable:$false] %s2167_s18 }
 0x479   : > { %p2165_p10 = pnand %p2164_p4, %p2353_p9  ;;  %s2169_s12 = scalar_lea.vmem %s2168_s18, 1024 }
 0x47a   : > { %p2170_p12 = scmp.lt.s32.totalorder %s2889_s26, %s2168_s18  ;;  %p2171_p1 = scmp.lt.s32.totalorder %s2169_s12, %s2163_s1 }
 0x47b   : > { %p2166_p13 = pneg %p2165_p10 }
 0x47c   : > { %p2172_p2 = por %p2171_p1, %p2170_p12 }
 0x47e   : > { %p2173_p5 = pnand %p2172_p2, %p2166_p13 }
 0x51f   : > { %v953_v0 = vpop.f32.mrf.mxu0 }
 0x520   : > { %v960_v8 = vcombine.high %v953_v0, %v953_v0  ;;  %v967_v10 = vrot.slane %v953_v0, %v2678_v25 }
 0x521   : > { %v1929_v23 = vpop.f32.mrf.mxu0 }
 0x522   : > { %v974_v24 = vrot.slane %v960_v8, %v2678_v25  ;;  %v975_v37 = vcombine.high %v967_v10, %v967_v10  ;;  %v983_v27 = vrot.slane %v967_v10, %v2678_v25 }
 0x523   : > { %v1255_v29 = vpop.f32.mrf.mxu0 }
 0x524   : > { %v976_v26 = vcombine.high %v974_v24, %v974_v24  ;;  %v990_v28 = vrot.slane %v974_v24, %v2678_v25  ;;  %v997_v32 = vrot.slane %v975_v37, %v2678_v25  ;;  %v1005_v36 = vcombine.high %v983_v27, %v983_v27  ;;  %1017 = vst.msk [vmem:[%s2686_s8 + $0x1] sm:$0x1] %vm714_vm12, %v983_v27 }
 0x525   : > { %v1262_v38 = vcombine.high %v1255_v29, %v1255_v29  ;;  %v1269_v39 = vrot.slane %v1255_v29, %v2678_v25  ;;  %v1939_v40 = vpop.f32.mrf.mxu0 }
 0x526   : > { %v1004_v41 = vrot.slane %v976_v26, %v2678_v25  ;;  %v1006_v42 = vcombine.high %v990_v28, %v990_v28  ;;  %v1007_v43 = vcombine.high %v997_v32, %v997_v32  ;;  %1018 = vst.msk [vmem:[%s2686_s8 + $0x5] sm:$0x1] %vm714_vm12, %v997_v32  ;;  %1019 = vst.msk [vmem:[%s2686_s8 + $0x9] sm:$0x1] %vm714_vm12, %v1005_v36 }
 0x527   : > { %1021 = vst.msk [vmem:[%s2686_s8 + $0x11] sm:$0x1] %vm714_vm12, %v990_v28  ;;  %v1276_v44 = vrot.slane %v1262_v38, %v2678_v25  ;;  %v1277_v30 = vcombine.high %v1269_v39, %v1269_v39  ;;  %v1285_v45 = vrot.slane %v1269_v39, %v2678_v25  ;;  %v1557_v46 = vpop.f32.mrf.mxu0 }
 0x528   : > { %v1008_v47 = vcombine.high %v1004_v41, %v1004_v41  ;;  %1020 = vst.msk [vmem:[%s2686_s8 + $0xd] sm:$0x1] %vm714_vm12, %v1007_v43  ;;  %1022 = vst.msk [vmem:[%s2686_s8 + $0x15] sm:$0x1] %vm714_vm12, %v1004_v41  ;;  %v1564_v48 = vcombine.high %v1557_v46, %v1557_v46  ;;  %v1571_v49 = vrot.slane %v1557_v46, %v2678_v25 }
 0x529   : > { %1023 = vst.msk [vmem:[%s2686_s8 + $0x19] sm:$0x1] %vm714_vm12, %v1006_v42  ;;  %v1278_v50 = vcombine.high %v1276_v44, %v1276_v44  ;;  %v1292_v51 = vrot.slane %v1276_v44, %v2678_v25  ;;  %v1299_v52 = vrot.slane %v1277_v30, %v2678_v25  ;;  %v1307_v53 = vcombine.high %v1285_v45, %v1285_v45  ;;  %v1949_v54 = vpop.f32.mrf.mxu0 }
 0x52a   : > { %1319 = vst.msk [vmem:[%s2686_s8 + $0x2] sm:$0x1] %vm714_vm12, %v1285_v45  ;;  %1024 = vst.msk [vmem:[%s2686_s8 + $0x1d] sm:$0x1] %vm714_vm12, %v1008_v47  ;;  %v1578_v55 = vrot.slane %v1564_v48, %v2678_v25  ;;  %v1579_v56 = vcombine.high %v1571_v49, %v1571_v49  ;;  %v1587_v58 = vrot.slane %v1571_v49, %v2678_v25 }
 0x52b   : > { %v1306_v59 = vrot.slane %v1278_v50, %v2678_v25  ;;  %v1308_v60 = vcombine.high %v1292_v51, %v1292_v51  ;;  %v1309_v61 = vcombine.high %v1299_v52, %v1299_v52  ;;  %1320 = vst.msk [vmem:[%s2686_s8 + $0x6] sm:$0x1] %vm714_vm12, %v1299_v52  ;;  %1321 = vst.msk [vmem:[%s2686_s8 + $0xa] sm:$0x1] %vm714_vm12, %v1307_v53 }
 0x52c   : > { %1323 = vst.msk [vmem:[%s2686_s8 + $0x12] sm:$0x1] %vm714_vm12, %v1292_v51  ;;  %v1580_v62 = vcombine.high %v1578_v55, %v1578_v55  ;;  %v1594_v63 = vrot.slane %v1578_v55, %v2678_v25  ;;  %v1601_v1 = vrot.slane %v1579_v56, %v2678_v25  ;;  %v1609_v3 = vcombine.high %v1587_v58, %v1587_v58 }
 0x52d   : > { %1621 = vst.msk [vmem:[%s2686_s8 + $0x3] sm:$0x1] %vm714_vm12, %v1587_v58  ;;  %v1310_v4 = vcombine.high %v1306_v59, %v1306_v59  ;;  %1322 = vst.msk [vmem:[%s2686_s8 + $0xe] sm:$0x1] %vm714_vm12, %v1309_v61 }
 0x52e   : > { %1324 = vst.msk [vmem:[%s2686_s8 + $0x16] sm:$0x1] %vm714_vm12, %v1306_v59  ;;  %1325 = vst.msk [vmem:[%s2686_s8 + $0x1a] sm:$0x1] %vm714_vm12, %v1308_v60  ;;  %v1608_v5 = vrot.slane %v1580_v62, %v2678_v25  ;;  %v1610_v6 = vcombine.high %v1594_v63, %v1594_v63  ;;  %v1611_v57 = vcombine.high %v1601_v1, %v1601_v1 }
 0x52f   : > { %1622 = vst.msk [vmem:[%s2686_s8 + $0x7] sm:$0x1] %vm714_vm12, %v1601_v1  ;;  %1623 = vst.msk [vmem:[%s2686_s8 + $0xb] sm:$0x1] %vm714_vm12, %v1609_v3 }
 0x530   : > { %1625 = vst.msk [vmem:[%s2686_s8 + $0x13] sm:$0x1] %vm714_vm12, %v1594_v63  ;;  %1326 = vst.msk [vmem:[%s2686_s8 + $0x1e] sm:$0x1] %vm714_vm12, %v1310_v4  ;;  %v1612_v25 = vcombine.high %v1608_v5, %v1608_v5 }
 0x531   : > { %1624 = vst.msk [vmem:[%s2686_s8 + $0xf] sm:$0x1] %vm714_vm12, %v1611_v57  ;;  %1626 = vst.msk [vmem:[%s2686_s8 + $0x17] sm:$0x1] %vm714_vm12, %v1608_v5 }
 0x532   : > { %1627 = vst.msk [vmem:[%s2686_s8 + $0x1b] sm:$0x1] %vm714_vm12, %v1610_v6  ;;  %1628 = vst.msk [vmem:[%s2686_s8 + $0x1f] sm:$0x1] %vm714_vm12, %v1612_v25 }
 0x533   : > { %2176 = shalt.err (!%p2173_p5)
}
 0x534   : > { %s2177_s8 = scalar_lea.hbm %s2887_s16, 512  ;;  %s2181_s7 = scalar_lea.hbm %s2949_s4, 1024 }
 0x535   : > { %p2178_p6 = scmp.ne.s32.totalorder %s2887_s16, %s2177_s8  ;;  %p2182_p0 = scmp.lt.s32.totalorder %s2887_s16, %s2949_s4 }
 0x536   : > { %p2183_p3 = scmp.lt.s32.totalorder %s2181_s7, %s2177_s8 }
 0x537   : > { %p2179_p7 = pnand %p2178_p6, %p2353_p9 }
 0x538   : > { %p2184_p4 = por %p2183_p3, %p2182_p0 }
 0x539   : > { %p2180_p8 = pneg %p2179_p7 }
 0x53b   : > { %p2185_p10 = pnand %p2184_p4, %p2180_p8 }
 0x53d   : > { %2188 = shalt.err (!%p2185_p10)
}
 0x53e   : > { %s2266_s24 = smov 64   ;;  %s2267_s30 = smov 4  }
 0x53f   : > { %1956 = dma.vmem_to_hbm [thread:$0]  (%p2353_p9), %s2889_s26, 512, %s2887_s16, %s1630_s21, %s2266_s24, %s2266_s24, %s2267_s30  }
 0x540 PF: > { %s2975_s13 = sld [smem:[#allocation15_spill]]  ;;  %p2977_p13 = scmp.ge.s32.totalorder %s2251_s23, 2 }
 0x542   : > { %p1971_p12 = pnand %p2977_p13, %p2360_p11 }
 0x544   : > { %p1972_p1 = pneg %p1971_p12 }
 0x546   : > { %s1682_s17 = sand.u32 1, %s2975_s13  }
 0x547   : > { %s1683_s22 = scalar_lea.sflag [#allocation4], %s1682_s17 }
 0x548   : > { %2222 = dma.done.wait (%p1972_p1), %s1683_s22, 512  }
 0x549   : > { %2224 = vsyncadd (%p1972_p1), %s1683_s22, 4294966784  ;;  %s1692_s15 = scalar_lea.sflag [#allocation10], %s1682_s17 }
 0x54a   : > { %2226 = dma.done.wait (%p1972_p1), %s1692_s15, 512  }
 0x54b   : > { %2228 = vsyncadd (%p1972_p1), %s1692_s15, 4294966784  ;;  %s28_s23 = sadd.s32 1, %s2251_s23   ;;  %s2978_s6 = sld [smem:[#allocation18_spill]] }
 0x54c   : > { %p25_p2 = scmp.ge.s32.totalorder %s28_s23, 4   ;;  %s2979_s21 = sld [smem:[#allocation16_spill]] }
 0x54d   : > { %s2980_s22 = sld [smem:[#allocation17_spill]]  ;;  %s2981_s18 = smov %s2235_s19 }
 0x54e   : > { %s2982_s19 = smov %s2239_s20  ;;  %27 = sbr.rel (!%p25_p2) target bundleno = 12 (0xc), region = 128 }
 0x551   : > { %s2983_s20 = smov %s2978_s6 }
 0x553   :  { %1697 = vsyncpa [#allocation3], 1 }
 0x554   :  { %1699 = vsyncpa [#allocation3 + $0x1], 1 }
 0x555   :  { %1700 = vsyncpa [#allocation6], 1 }
 0x556   :  { %1702 = vsyncpa [#allocation6 + $0x1], 1 }
 0x557   :  { %1703 = vsyncpa [#allocation4], 1 }
 0x558   :  { %1705 = vsyncpa [#allocation4 + $0x1], 1 }
 0x559   :  { %1706 = vsyncpa [#allocation10], 1 }
 0x55a   :  { %1708 = vsyncpa [#allocation10 + $0x1], 1 }

</bundles_post_ra>
